<compile_context>
chip_gen: v6e
topology: v6e:2x2x1
jax: 0.10.0
libtpu: 0.0.40
codegen_flags: <defaults>
</compile_context>

<pallas_src>
import functools

import jax
import jax.numpy as jnp
from jax.experimental import pallas as pl
from jax.experimental.pallas import tpu as pltpu


def _linear_kernel(x_ref, w_ref, b_ref, o_ref):
    # x_ref: (TM, in_dim), w_ref: (in_dim, TN), b_ref: (1, TN), o_ref: (TM, TN)
    acc = jnp.dot(x_ref[...], w_ref[...], preferred_element_type=jnp.float32)
    o_ref[...] = (acc + b_ref[...]).astype(o_ref.dtype)


def prepare_proj_params(weight: jnp.ndarray, bias: jnp.ndarray):
    """One-time parameter preparation (do this at load time, not per call).

    weight: (out_dim, in_dim) float32  (PyTorch nn.Linear layout)
    bias:   (out_dim,) float32
    Returns (w_prep (in_dim, out_pad), b_prep (1, out_pad), out_dim) where
    out_pad is out_dim rounded up to a multiple of 128 for lane-dense stores.
    """
    out_dim, in_dim = weight.shape
    out_pad = out_dim + ((-out_dim) % 128)
    w_t = jnp.transpose(weight)                      # (in_dim, out_dim)
    if out_pad != out_dim:
        w_t = jnp.pad(w_t, ((0, 0), (0, out_pad - out_dim)))
        b = jnp.pad(bias, (0, out_pad - out_dim))
    else:
        b = bias
    return w_t, b.reshape(1, out_pad), out_dim


@functools.partial(jax.jit, static_argnames=("out_dim", "tm", "tn"))
def proj_net_linear(audio_feat: jnp.ndarray,
                    w_prep: jnp.ndarray,
                    b_prep: jnp.ndarray,
                    *,
                    out_dim: int,
                    tm: int = 512,
                    tn: int = 512) -> jnp.ndarray:
    """Pallas forward of Proj_net (projection_type='Linear').

    audio_feat: (B, S, in_dim)
    w_prep:     (in_dim, out_pad)  from prepare_proj_params
    b_prep:     (1, out_pad)
    returns:    (B, S, out_dim)
    """
    B, S, in_dim = audio_feat.shape
    out_pad = w_prep.shape[1]
    M = B * S

    x2d = audio_feat.reshape(M, in_dim)

    # Tile rows and output columns. For tiny extents use a single full block
    # (always legal); otherwise tiles are multiples of (8, 128) and Pallas
    # handles partial edge blocks.
    TM = M if M <= tm else tm
    TN = out_pad if out_pad <= tn else tn
    grid = (pl.cdiv(M, TM), pl.cdiv(out_pad, TN))

    out = pl.pallas_call(
        _linear_kernel,
        out_shape=jax.ShapeDtypeStruct((M, out_pad), audio_feat.dtype),
        grid_spec=pl.GridSpec(
            grid=grid,
            in_specs=[
                pl.BlockSpec((TM, in_dim), lambda i, j: (i, 0)),
                pl.BlockSpec((in_dim, TN), lambda i, j: (0, j)),
                pl.BlockSpec((1, TN), lambda i, j: (0, j)),
            ],
            out_specs=pl.BlockSpec((TM, TN), lambda i, j: (i, j)),
        ),
        compiler_params=pltpu.CompilerParams(
            dimension_semantics=("parallel", "parallel"),
            vmem_limit_bytes=32 * 1024 * 1024,
        ),
    )(x2d, w_prep, b_prep)

    if out_pad != out_dim:
        out = out[:, :out_dim]
    return out.reshape(B, S, out_dim)


if __name__ == "__main__":
    # Small shapes consistent with the module: batch=2, seq=8, in_dim=32, out_dim=16
    B, S, IN_DIM, OUT_DIM = 2, 8, 32, 16

    key = jax.random.PRNGKey(0)
    k_x, k_w, k_b = jax.random.split(key, 3)

    audio_feat = jax.random.normal(k_x, (B, S, IN_DIM), dtype=jnp.float32)
    audio_len = jnp.full((B,), S, dtype=jnp.int32)  # unused in the 'Linear' branch

    # Deterministic parameter init (nn.Linear shapes: weight (out, in), bias (out,))
    bound = 1.0 / (IN_DIM ** 0.5)
    weight = jax.random.uniform(k_w, (OUT_DIM, IN_DIM), jnp.float32, -bound, bound)
    bias = jax.random.uniform(k_b, (OUT_DIM,), jnp.float32, -bound, bound)

    # Parameter preparation happens once (out of the hot path).
    w_prep, b_prep, out_dim = prepare_proj_params(weight, bias)

    out = proj_net_linear(audio_feat, w_prep, b_prep, out_dim=out_dim)
    out = jax.block_until_ready(out)

    # Cross-check against plain-JAX reference of nn.Linear semantics.
    ref = audio_feat @ weight.T + bias
    assert out.shape == (B, S, OUT_DIM)
    assert jnp.allclose(out, ref, atol=1e-5, rtol=1e-5)

    print("KERNEL_OK")
</pallas_src>

<mosaic_0001>
module attributes {stable_mosaic.version = 11 : i64} {
  func.func @_linear_kernel(%arg0: i32, %arg1: i32, %arg2: memref<16x32xf32, #tpu.memory_space<vmem>>, %arg3: memref<32x128xf32, #tpu.memory_space<vmem>>, %arg4: memref<1x128xf32, #tpu.memory_space<vmem>>, %arg5: memref<16x128xf32, #tpu.memory_space<vmem>>) attributes {dimension_semantics = [#tpu.dimension_semantics<parallel>, #tpu.dimension_semantics<parallel>], iteration_bounds = array<i64: 1, 1>, scalar_prefetch = 0 : i64, scratch_operands = 0 : i64, tpu.core_type = #tpu.core_type<tc>, window_params = [{transform_indices = @transform_0, window_bounds = array<i64: 16, 32>}, {transform_indices = @transform_1, window_bounds = array<i64: 32, 128>}, {transform_indices = @transform_2, window_bounds = array<i64: 1, 128>}, {transform_indices = @transform_3, window_bounds = array<i64: 16, 128>}]} {
    %c0 = arith.constant 0 : index
    %c0_0 = arith.constant 0 : index
    %0 = vector.load %arg2[%c0, %c0_0] : memref<16x32xf32, #tpu.memory_space<vmem>>, vector<16x32xf32>
    %c0_1 = arith.constant 0 : index
    %c0_2 = arith.constant 0 : index
    %1 = vector.load %arg3[%c0_1, %c0_2] : memref<32x128xf32, #tpu.memory_space<vmem>>, vector<32x128xf32>
    %cst = arith.constant dense<0.000000e+00> : vector<16x128xf32>
    %2 = tpu.matmul %0, %1, %cst {dimension_numbers = #tpu.dot_dimension_numbers<[1], [0], [0], [1], [0, 0, 1, 1], [], []>} : vector<16x32xf32>, vector<32x128xf32>, vector<16x128xf32> -> vector<16x128xf32>
    %c0_3 = arith.constant 0 : index
    %c0_4 = arith.constant 0 : index
    %3 = vector.load %arg4[%c0_3, %c0_4] : memref<1x128xf32, #tpu.memory_space<vmem>>, vector<1x128xf32>
    %4 = vector.broadcast %3 : vector<1x128xf32> to vector<16x128xf32>
    %5 = arith.addf %2, %4 : vector<16x128xf32>
    %c0_5 = arith.constant 0 : index
    %c0_6 = arith.constant 0 : index
    %6 = vector.load %arg5[%c0_5, %c0_6] : memref<16x128xf32, #tpu.memory_space<vmem>>, vector<16x128xf32>
    tpu.vector_store %arg5[%c0_5, %c0_6], %5 {strides = array<i32>} : memref<16x128xf32, #tpu.memory_space<vmem>>, vector<16x128xf32>,
    return
  }
  func.func @transform_0(%arg0: i32, %arg1: i32) -> (i32, i32) {
    %c0_i32 = arith.constant 0 : i32
    %c0_i32_0 = arith.constant 0 : i32
    return %arg0, %c0_i32 : i32, i32
  }
  func.func @transform_1(%arg0: i32, %arg1: i32) -> (i32, i32) {
    %c0_i32 = arith.constant 0 : i32
    %c0_i32_0 = arith.constant 0 : i32
    return %c0_i32, %arg1 : i32, i32
  }
  func.func @transform_2(%arg0: i32, %arg1: i32) -> (i32, i32) {
    %c0_i32 = arith.constant 0 : i32
    %c0_i32_0 = arith.constant 0 : i32
    return %c0_i32, %arg1 : i32, i32
  }
  func.func @transform_3(%arg0: i32, %arg1: i32) -> (i32, i32) {
    %c0_i32 = arith.constant 0 : i32
    return %arg0, %arg1 : i32, i32
  }
}

</mosaic_0001>

<bundles_post_ra>
// kernel: proj_net_linear.1
= control target key start
LH: loop header
LB: loop body
LE: loop exit
PB: predicated region body
PF: predicated region fallthrough
CT: control target
= control target key end

     0   :  { %8 = vsyncpa [#allocation3], 0  ;;  %s254_s0 = inlined_call_operand.hbm [shape: f32[16,32], index: 0, kind: input, shape index: {}]   ;;  %s255_s1 = inlined_call_operand.hbm [shape: f32[32,128], index: 1, kind: input, shape index: {}]   ;;  %s256_s2 = inlined_call_operand.vmem [shape: f32[1,128], index: 2, kind: input, shape index: {}]   ;;  %s257_s3 = inlined_call_operand.vmem [shape: f32[16,128], index: 3, kind: output, shape index: {}]  }
   0x1   :  { %9 = vsyncpa [#allocation5], 0  ;;  %s213_s12 = smov [#allocation2]  }
   0x2   :  { %s15_s13 = sshll.u32 %s213_s12, 4  ;;  %s16_s13 = int_to_ptr.vmem [resolvable:$true] %s15_s13 }
   0x3   :  { %s177_s14 = scalar_lea.vmem %s16_s13, 256  ;;  %p182_p1 = scmp.lt.s32.totalorder %s16_s13, %s16_s13 }
   0x4   :  { %p178_p0 = scmp.ne.s32.totalorder %s16_s13, %s177_s14  ;;  %p183_p2 = scmp.lt.s32.totalorder %s177_s14, %s177_s14 }
   0x6   :  { %p184_p3 = por %p183_p2, %p182_p1 }
   0x8   :  { %p185_p4 = pnand %p184_p3, %p178_p0 }
   0xa   :  { %188 = shalt.err (!%p185_p4)
}
   0xb   :  { %s214_s15 = smov 128   ;;  %s215_s16 = smov 8  }
   0xc   :  { %21 = dma.hbm_to_vmem [thread:$0]  %s254_s0, 256, %s16_s13, [#allocation3], %s214_s15, %s214_s15, %s215_s16  }
   0xd   :  { %s216_s19 = smov [#allocation4]  }
   0xe   :  { %s27_s20 = sshll.u32 %s216_s19, 4  ;;  %s28_s20 = int_to_ptr.vmem [resolvable:$true] %s27_s20 }
   0xf   :  { %s197_s21 = scalar_lea.vmem %s28_s20, 512  ;;  %p202_p6 = scmp.lt.s32.totalorder %s28_s20, %s28_s20 }
  0x10   :  { %p198_p5 = scmp.ne.s32.totalorder %s28_s20, %s197_s21  ;;  %p203_p7 = scmp.lt.s32.totalorder %s197_s21, %s197_s21 }
  0x12   :  { %p204_p8 = por %p203_p7, %p202_p6 }
  0x14   :  { %p205_p9 = pnand %p204_p8, %p198_p5 }
  0x16   :  { %208 = shalt.err (!%p205_p9)
}
  0x17   :  { %33 = dma.hbm_to_vmem [thread:$0]  %s255_s1, 512, %s28_s20, [#allocation5], %s214_s15, %s214_s15, %s215_s16  }
  0x18   :  { %209 = dma.done.wait [#allocation3], 256  }
  0x19   :  { %210 = vsyncadd [#allocation3], 4294967040 }
  0x1a   :  { %211 = dma.done.wait [#allocation5], 512  }
  0x1b   :  { %212 = vsyncadd [#allocation5], 4294966784  ;;  %vm55_vm0 = vcmask 261120   ;;  %v47_v0 = vld [vmem:[#allocation4 + $0x18] sm:$0xff]  ;;  %v46_v1 = vld [vmem:[#allocation4 + $0x10] sm:$0xff] }
  0x1c   :  { %154 = vmatprep.subr.mxu0 %v47_v0  ;;  %v42_v2 = vld [vmem:[#allocation2] sm:$0xff]  ;;  %v45_v3 = vld [vmem:[#allocation4 + $0x8] sm:$0xff]  ;;  %v44_v4 = vld [vmem:[#allocation4] sm:$0xff] }
  0x1d   :  { %155 = vmatpush3.msra.mxu0 %v47_v0  ;;  %162 = vmatprep.mubr.msk.f32.mxu0 %vm55_vm0, %v42_v2  ;;  %v43_v5 = vld [vmem:[#allocation2 + $0x8] sm:$0xff]  ;;  %v145_v6 = vld [vmem:[%s256_s2] ss:$0 sm:$0xff] }
  0x1e   :  { %156 = vmatprep.subr.mxu0 %v46_v1 }
  0x1f   :  { %157 = vmatpush3.msra.mxu0 %v46_v1 }
  0x20   :  { %158 = vmatprep.subr.mxu0 %v45_v3 }
  0x21   :  { %159 = vmatpush3.msra.mxu0 %v45_v3 }
  0x22   :  { %160 = vmatprep.subr.mxu0 %v44_v4 }
  0x23   :  { %161 = vmatpush3.msra.mxu0 %v44_v4 }
  0x24   :  { %163 = vmatmul.mubr.msk.f32.vlgmr.msra.gmra.mxu0 %vm55_vm0, %v43_v5 }
  0xe4   :  { %v164_v7 = vpop.f32.mrf.mxu0 }
  0xe5   :  { %v134_v8 = vadd.f32 %v164_v7, %v145_v6 }
  0xe6   :  { %v128_v9 = vpop.f32.mrf.mxu0 }
  0xe7   :  { %138 = vst [vmem:[%s257_s3 + $0x8] sm:$0xff] %v134_v8  ;;  %v129_v10 = vadd.f32 %v145_v6, %v128_v9 }
  0xe9   :  { %137 = vst [vmem:[%s257_s3] sm:$0xff] %v129_v10 }
  0xea   :  { %143 = vsyncpa [#allocation3], 1 }
  0xeb   :  { %144 = vsyncpa [#allocation5], 1 }

</bundles_post_ra>
